<compile_context>
chip_gen: v7x
topology: tpu7x:2x2x1
jax: 0.10.0
libtpu: 0.0.40
codegen_flags: <defaults>
</compile_context>

<pallas_src>
import functools
import math

import jax
import jax.numpy as jnp
from jax.experimental import pallas as pl
from jax.experimental.pallas import tpu as pltpu


def _fire_kernel(x_ref, wsq_ref, bsq_ref, wf_ref, bf_ref, o_ref,
                 s_pad_ref, taps_ref, *, width, lmargin, hw, cs, csp):
    # x_ref  : (NB, Cin, HW)       input, flattened spatial
    # wsq    : (Cs, Cin)           squeeze 1x1 weights (bf16)
    # bsq    : (Cs, 1)             squeeze bias (f32)
    # wf     : (Cout, 9*Csp)       fused expand weights (bf16); expand1x1 lives
    #                              in the centre-tap (i=4) column block
    # bf     : (Cout, 1)           fused expand bias (f32), [b_e1; b_e3]
    # o_ref  : (NB, Cout, HWp)     concatenated output channels, lane-dense
    # s_pad  : (Cs, Ntot)  f32     zero-padded squeezed map (VMEM scratch)
    # taps   : (9*Csp, HWp) f32    stacked 3x3 taps along the contraction axis
    nb = x_ref.shape[0]
    hwp = o_ref.shape[-1]

    # Column-wrap validity masks for the dx = -1 / +1 taps (built in-kernel).
    col = jax.lax.broadcasted_iota(jnp.int32, (1, hwp), 1) % width
    mask_l = (col > 0).astype(jnp.float32)            # dx = -1 valid
    mask_r = (col < width - 1).astype(jnp.float32)    # dx = +1 valid

    # Zero margins of s_pad provide the 3x3 conv zero padding; padded rows of
    # the tap stack (when csp > cs) must be zero so their 0-weight columns
    # never contribute (avoids 0 * garbage).
    s_pad_ref[...] = jnp.zeros_like(s_pad_ref)
    if csp != cs:
        taps_ref[...] = jnp.zeros_like(taps_ref)

    wsq = wsq_ref[...]
    bsq = bsq_ref[...]
    wf = wf_ref[...]
    bf = bf_ref[...]

    for b in range(nb):
        # --- squeeze: 1x1 conv + ReLU (bf16 MXU operands, f32 accumulate) ----
        x = x_ref[b, :, :].astype(jnp.bfloat16)                   # (Cin, HW)
        s = jnp.dot(wsq, x, preferred_element_type=jnp.float32)   # (Cs, HW)
        s = jnp.maximum(s + bsq, 0.0)
        s_pad_ref[:, lmargin:lmargin + hw] = s                    # aligned store

        # --- pack the 9 shifted (+masked) taps along the contraction axis ----
        for i in range(9):
            dy = i // 3 - 1
            dx = i % 3 - 1
            off = lmargin + dy * width + dx                       # static offset
            t = s_pad_ref[:, off:off + hwp]                       # (Cs, HWp)
            if dx == -1:
                t = t * mask_l
            elif dx == 1:
                t = t * mask_r
            taps_ref[i * csp:i * csp + cs, :] = t

        # --- fused expand1x1 + expand3x3: one wide-K MXU matmul ---------------
        taps = taps_ref[...].astype(jnp.bfloat16)                 # (9*Csp, HWp)
        e = jnp.dot(wf, taps, preferred_element_type=jnp.float32)  # (Cout, HWp)
        e = jnp.maximum(e + bf, 0.0)
        o_ref[b, :, :] = e.astype(o_ref.dtype)                    # one full store


def fire_block(x, w_sq, b_sq, w_e1, b_e1, w_e3, b_e3):
    """FireBlock forward.  x: (B, Cin, H, W); conv weights in OIHW layout."""
    B, Cin, H, W = x.shape
    Cs = w_sq.shape[0]
    Ce1 = w_e1.shape[0]
    Ce3 = w_e3.shape[0]
    Cout = Ce1 + Ce3
    HW = H * W
    HWp = ((HW + 127) // 128) * 128            # lane-dense output width
    Csp = ((Cs + 7) // 8) * 8                  # sublane-aligned per-tap stride
    Lm = ((W + 1 + 127) // 128) * 128          # 128-aligned left margin >= W+1
    Ntot = Lm + (W + 1) + HWp                  # fits every tap-shifted read

    # Batch elements per grid step: amortize per-step overhead while keeping at
    # least two grid grains (dual-TensorCore chips) whenever B > 1.
    NB = 1
    for cand in (4, 2):
        if B % cand == 0 and B // cand >= 2:
            NB = cand
            break

    x2 = x.reshape(B, Cin, HW)                 # free reshape; no padded HBM copy

    w_sq2 = w_sq.reshape(Cs, Cin).astype(jnp.bfloat16)
    b_sq2 = b_sq.reshape(Cs, 1).astype(jnp.float32)

    # Fused expand weight (Cout, 9*Csp): rows [0,Ce1) = expand1x1 in the
    # centre-tap column block, rows [Ce1,Cout) = expand3x3 tap-major.
    w_e3_taps = jnp.transpose(w_e3, (2, 3, 0, 1)).reshape(9, Ce3, Cs)
    w_f = jnp.zeros((Cout, 9, Csp), jnp.float32)
    w_f = w_f.at[Ce1:, :, :Cs].set(jnp.transpose(w_e3_taps, (1, 0, 2)))
    w_f = w_f.at[:Ce1, 4, :Cs].set(w_e1.reshape(Ce1, Cs))
    w_f = w_f.reshape(Cout, 9 * Csp).astype(jnp.bfloat16)
    b_f = jnp.concatenate([b_e1, b_e3]).reshape(Cout, 1).astype(jnp.float32)

    kernel = functools.partial(_fire_kernel, width=W, lmargin=Lm, hw=HW,
                               cs=Cs, csp=Csp)
    out = pl.pallas_call(
        kernel,
        out_shape=jax.ShapeDtypeStruct((B, Cout, HWp), x.dtype),
        grid=(B // NB,),
        in_specs=[
            pl.BlockSpec((NB, Cin, HW), lambda g: (g, 0, 0)),     # x
            pl.BlockSpec((Cs, Cin), lambda g: (0, 0)),            # squeeze W
            pl.BlockSpec((Cs, 1), lambda g: (0, 0)),              # squeeze b
            pl.BlockSpec((Cout, 9 * Csp), lambda g: (0, 0)),      # fused expand W
            pl.BlockSpec((Cout, 1), lambda g: (0, 0)),            # fused expand b
        ],
        out_specs=pl.BlockSpec((NB, Cout, HWp), lambda g: (g, 0, 0)),
        scratch_shapes=[
            pltpu.VMEM((Cs, Ntot), jnp.float32),                  # padded squeezed map
            pltpu.VMEM((9 * Csp, HWp), jnp.float32),              # stacked taps
        ],
        compiler_params=pltpu.CompilerParams(
            dimension_semantics=("parallel",)),
    )(x2, w_sq2, b_sq2, w_f, b_f)

    return out[:, :, :HW].reshape(B, Cout, H, W)


def fire_block_ref(x, w_sq, b_sq, w_e1, b_e1, w_e3, b_e3):
    """Pure-JAX reference matching the PyTorch FireBlock forward."""
    dn = ("NCHW", "OIHW", "NCHW")

    def conv(a, w, b, padding):
        y = jax.lax.conv_general_dilated(
            a, w, window_strides=(1, 1), padding=padding,
            dimension_numbers=dn, precision=jax.lax.Precision.HIGHEST)
        return y + b[None, :, None, None]

    s = jnp.maximum(conv(x, w_sq, b_sq, [(0, 0), (0, 0)]), 0.0)
    e1 = jnp.maximum(conv(s, w_e1, b_e1, [(0, 0), (0, 0)]), 0.0)
    e3 = jnp.maximum(conv(s, w_e3, b_e3, [(1, 1), (1, 1)]), 0.0)
    return jnp.concatenate([e1, e3], axis=1)


if __name__ == "__main__":
    # Small Fire module: in=16 -> squeeze=8 -> expand 16 + 16 (out channels 32).
    B, Cin, H, W = 2, 16, 16, 16
    Cs, Ce1, Ce3 = 8, 16, 16

    key = jax.random.PRNGKey(0)
    ks = jax.random.split(key, 7)
    x = jax.random.normal(ks[0], (B, Cin, H, W), dtype=jnp.float32)

    def init(k, shape, fan_in):
        bound = 1.0 / math.sqrt(fan_in)
        return jax.random.uniform(k, shape, jnp.float32, -bound, bound)

    w_sq = init(ks[1], (Cs, Cin, 1, 1), Cin)
    b_sq = init(ks[2], (Cs,), Cin)
    w_e1 = init(ks[3], (Ce1, Cs, 1, 1), Cs)
    b_e1 = init(ks[4], (Ce1,), Cs)
    w_e3 = init(ks[5], (Ce3, Cs, 3, 3), Cs * 9)
    b_e3 = init(ks[6], (Ce3,), Cs * 9)

    out = fire_block(x, w_sq, b_sq, w_e1, b_e1, w_e3, b_e3)
    jax.block_until_ready(out)

    ref = fire_block_ref(x, w_sq, b_sq, w_e1, b_e1, w_e3, b_e3)
    assert out.shape == (B, Ce1 + Ce3, H, W)
    # bf16 MXU operands (f32 accumulation) compared against a f32
    # Precision.HIGHEST reference -> loosened tolerance per review.
    assert jnp.allclose(out, ref, atol=3e-2, rtol=3e-2), (
        "mismatch vs reference, max abs err = %e"
        % float(jnp.max(jnp.abs(out - ref))))

    print("KERNEL_OK")
</pallas_src>

<mosaic_0001>
module attributes {stable_mosaic.version = 11 : i64} {
  func.func @_fire_kernel(%arg0: i32, %arg1: memref<1x16x256xf32, #tpu.memory_space<vmem>>, %arg2: memref<8x16xbf16, #tpu.memory_space<vmem>>, %arg3: memref<8x1xf32, #tpu.memory_space<vmem>>, %arg4: memref<32x72xbf16, #tpu.memory_space<vmem>>, %arg5: memref<32x1xf32, #tpu.memory_space<vmem>>, %arg6: memref<1x32x256xf32, #tpu.memory_space<vmem>>, %arg7: memref<8x401xf32, #tpu.memory_space<vmem>>, %arg8: memref<72x256xf32, #tpu.memory_space<vmem>>) attributes {dimension_semantics = [#tpu.dimension_semantics<parallel>], iteration_bounds = array<i64: 2>, scalar_prefetch = 0 : i64, scratch_operands = 2 : i64, tpu.core_type = #tpu.core_type<tc>, window_params = [{transform_indices = @transform_0, window_bounds = array<i64: 1, 16, 256>}, {pipeline_mode = #tpu.pipeline_mode<synchronous>, transform_indices = @transform_1, window_bounds = array<i64: 8, 16>}, {pipeline_mode = #tpu.pipeline_mode<synchronous>, transform_indices = @transform_2, window_bounds = array<i64: 8, 1>}, {pipeline_mode = #tpu.pipeline_mode<synchronous>, transform_indices = @transform_3, window_bounds = array<i64: 32, 72>}, {pipeline_mode = #tpu.pipeline_mode<synchronous>, transform_indices = @transform_4, window_bounds = array<i64: 32, 1>}, {transform_indices = @transform_5, window_bounds = array<i64: 1, 32, 256>}]} {
    %0 = tpu.iota {dimensions = array<i32: 1>} : vector<1x256xi32>
    %c16_i32 = arith.constant 16 : i32
    %c0_i32 = arith.constant 0 : i32
    %1 = arith.cmpi eq, %c16_i32, %c0_i32 : i32
    %c1_i32 = arith.constant 1 : i32
    %2 = arith.select %1, %c1_i32, %c16_i32 : i32
    %3 = vector.broadcast %2 : i32 to vector<1x256xi32>
    %4 = arith.remsi %0, %3 : vector<1x256xi32>
    %c0_i32_0 = arith.constant 0 : i32
    %5 = vector.broadcast %c0_i32_0 : i32 to vector<1x256xi32>
    %6 = arith.cmpi ne, %4, %5 : vector<1x256xi32>
    %c0_i32_1 = arith.constant 0 : i32
    %7 = vector.broadcast %c0_i32_1 : i32 to vector<1x256xi32>
    %8 = arith.cmpi slt, %4, %7 : vector<1x256xi32>
    %c0_i32_2 = arith.constant 0 : i32
    %9 = arith.cmpi slt, %2, %c0_i32_2 : i32
    %10 = vector.broadcast %9 : i1 to vector<1x256xi1>
    %11 = vector.broadcast %10 : vector<1x256xi1> to vector<1x256xi1>
    %12 = arith.xori %8, %11 : vector<1x256xi1>
    %13 = arith.andi %12, %6 : vector<1x256xi1>
    %14 = vector.broadcast %2 : i32 to vector<1x256xi32>
    %15 = arith.addi %4, %14 : vector<1x256xi32>
    %16 = arith.select %13, %15, %4 : vector<1x256xi1>, vector<1x256xi32>
    %c0_i32_3 = arith.constant 0 : i32
    %17 = vector.broadcast %c0_i32_3 : i32 to vector<1x256xi32>
    %18 = arith.cmpi sgt, %16, %17 : vector<1x256xi32>
    %19 = arith.extui %18 : vector<1x256xi1> to vector<1x256xi32>
    %20 = arith.sitofp %19 : vector<1x256xi32> to vector<1x256xf32>
    %c15_i32 = arith.constant 15 : i32
    %21 = vector.broadcast %c15_i32 : i32 to vector<1x256xi32>
    %22 = arith.cmpi slt, %16, %21 : vector<1x256xi32>
    %23 = arith.extui %22 : vector<1x256xi1> to vector<1x256xi32>
    %24 = arith.sitofp %23 : vector<1x256xi32> to vector<1x256xf32>
    %cst = arith.constant 0.000000e+00 : f32
    %25 = vector.broadcast %cst : f32 to vector<8x401xf32>
    %c0 = arith.constant 0 : index
    %c0_4 = arith.constant 0 : index
    %26 = vector.load %arg7[%c0, %c0_4] : memref<8x401xf32, #tpu.memory_space<vmem>>, vector<8x401xf32>
    tpu.vector_store %arg7[%c0, %c0_4], %25 {strides = array<i32>} : memref<8x401xf32, #tpu.memory_space<vmem>>, vector<8x401xf32>,
    %c0_5 = arith.constant 0 : index
    %c0_6 = arith.constant 0 : index
    %27 = vector.load %arg2[%c0_5, %c0_6] : memref<8x16xbf16, #tpu.memory_space<vmem>>, vector<8x16xbf16>
    %c0_7 = arith.constant 0 : index
    %c0_8 = arith.constant 0 : index
    %28 = vector.load %arg3[%c0_7, %c0_8] : memref<8x1xf32, #tpu.memory_space<vmem>>, vector<8x1xf32>
    %c0_9 = arith.constant 0 : index
    %c0_10 = arith.constant 0 : index
    %29 = vector.load %arg4[%c0_9, %c0_10] : memref<32x72xbf16, #tpu.memory_space<vmem>>, vector<32x72xbf16>
    %c0_11 = arith.constant 0 : index
    %c0_12 = arith.constant 0 : index
    %30 = vector.load %arg5[%c0_11, %c0_12] : memref<32x1xf32, #tpu.memory_space<vmem>>, vector<32x1xf32>
    %c0_13 = arith.constant 0 : index
    %c0_14 = arith.constant 0 : index
    %c0_15 = arith.constant 0 : index
    %31 = vector.load %arg1[%c0_13, %c0_14, %c0_15] : memref<1x16x256xf32, #tpu.memory_space<vmem>>, vector<1x16x256xf32>
    %32 = vector.shape_cast %31 : vector<1x16x256xf32> to vector<16x256xf32>
    %33 = arith.truncf %32 : vector<16x256xf32> to vector<16x256xbf16>
    %cst_16 = arith.constant dense<0.000000e+00> : vector<8x256xf32>
    %34 = tpu.matmul %27, %33, %cst_16 {dimension_numbers = #tpu.dot_dimension_numbers<[1], [0], [0], [1], [0, 0, 1, 1], [], []>} : vector<8x16xbf16>, vector<16x256xbf16>, vector<8x256xf32> -> vector<8x256xf32>
    %35 = vector.broadcast %28 : vector<8x1xf32> to vector<8x256xf32>
    %36 = arith.addf %34, %35 : vector<8x256xf32>
    %cst_17 = arith.constant 0.000000e+00 : f32
    %37 = vector.broadcast %cst_17 : f32 to vector<8x256xf32>
    %38 = arith.maximumf %36, %37 : vector<8x256xf32>
    %c0_18 = arith.constant 0 : index
    %c128 = arith.constant 128 : index
    %39 = vector.load %arg7[%c0_18, %c128] : memref<8x401xf32, #tpu.memory_space<vmem>>, vector<8x256xf32>
    tpu.vector_store %arg7[%c0_18, %c128], %38 {strides = array<i32>} : memref<8x401xf32, #tpu.memory_space<vmem>>, vector<8x256xf32>,
    %c0_19 = arith.constant 0 : index
    %c111 = arith.constant 111 : index
    %40 = vector.load %arg7[%c0_19, %c111] : memref<8x401xf32, #tpu.memory_space<vmem>>, vector<8x256xf32>
    %41 = vector.broadcast %20 : vector<1x256xf32> to vector<8x256xf32>
    %42 = arith.mulf %40, %41 : vector<8x256xf32>
    %c0_20 = arith.constant 0 : index
    %c0_21 = arith.constant 0 : index
    %43 = vector.load %arg8[%c0_20, %c0_21] : memref<72x256xf32, #tpu.memory_space<vmem>>, vector<8x256xf32>
    tpu.vector_store %arg8[%c0_20, %c0_21], %42 {strides = array<i32>} : memref<72x256xf32, #tpu.memory_space<vmem>>, vector<8x256xf32>,
    %c0_22 = arith.constant 0 : index
    %c112 = arith.constant 112 : index
    %44 = vector.load %arg7[%c0_22, %c112] : memref<8x401xf32, #tpu.memory_space<vmem>>, vector<8x256xf32>
    %c8 = arith.constant 8 : index
    %c0_23 = arith.constant 0 : index
    %45 = vector.load %arg8[%c8, %c0_23] : memref<72x256xf32, #tpu.memory_space<vmem>>, vector<8x256xf32>
    tpu.vector_store %arg8[%c8, %c0_23], %44 {strides = array<i32>} : memref<72x256xf32, #tpu.memory_space<vmem>>, vector<8x256xf32>,
    %c0_24 = arith.constant 0 : index
    %c113 = arith.constant 113 : index
    %46 = vector.load %arg7[%c0_24, %c113] : memref<8x401xf32, #tpu.memory_space<vmem>>, vector<8x256xf32>
    %47 = vector.broadcast %24 : vector<1x256xf32> to vector<8x256xf32>
    %48 = arith.mulf %46, %47 : vector<8x256xf32>
    %c16 = arith.constant 16 : index
    %c0_25 = arith.constant 0 : index
    %49 = vector.load %arg8[%c16, %c0_25] : memref<72x256xf32, #tpu.memory_space<vmem>>, vector<8x256xf32>
    tpu.vector_store %arg8[%c16, %c0_25], %48 {strides = array<i32>} : memref<72x256xf32, #tpu.memory_space<vmem>>, vector<8x256xf32>,
    %c0_26 = arith.constant 0 : index
    %c127 = arith.constant 127 : index
    %50 = vector.load %arg7[%c0_26, %c127] : memref<8x401xf32, #tpu.memory_space<vmem>>, vector<8x256xf32>
    %51 = vector.broadcast %20 : vector<1x256xf32> to vector<8x256xf32>
    %52 = arith.mulf %50, %51 : vector<8x256xf32>
    %c24 = arith.constant 24 : index
    %c0_27 = arith.constant 0 : index
    %53 = vector.load %arg8[%c24, %c0_27] : memref<72x256xf32, #tpu.memory_space<vmem>>, vector<8x256xf32>
    tpu.vector_store %arg8[%c24, %c0_27], %52 {strides = array<i32>} : memref<72x256xf32, #tpu.memory_space<vmem>>, vector<8x256xf32>,
    %c0_28 = arith.constant 0 : index
    %c128_29 = arith.constant 128 : index
    %54 = vector.load %arg7[%c0_28, %c128_29] : memref<8x401xf32, #tpu.memory_space<vmem>>, vector<8x256xf32>
    %c32 = arith.constant 32 : index
    %c0_30 = arith.constant 0 : index
    %55 = vector.load %arg8[%c32, %c0_30] : memref<72x256xf32, #tpu.memory_space<vmem>>, vector<8x256xf32>
    tpu.vector_store %arg8[%c32, %c0_30], %54 {strides = array<i32>} : memref<72x256xf32, #tpu.memory_space<vmem>>, vector<8x256xf32>,
    %c0_31 = arith.constant 0 : index
    %c129 = arith.constant 129 : index
    %56 = vector.load %arg7[%c0_31, %c129] : memref<8x401xf32, #tpu.memory_space<vmem>>, vector<8x256xf32>
    %57 = vector.broadcast %24 : vector<1x256xf32> to vector<8x256xf32>
    %58 = arith.mulf %56, %57 : vector<8x256xf32>
    %c40 = arith.constant 40 : index
    %c0_32 = arith.constant 0 : index
    %59 = vector.load %arg8[%c40, %c0_32] : memref<72x256xf32, #tpu.memory_space<vmem>>, vector<8x256xf32>
    tpu.vector_store %arg8[%c40, %c0_32], %58 {strides = array<i32>} : memref<72x256xf32, #tpu.memory_space<vmem>>, vector<8x256xf32>,
    %c0_33 = arith.constant 0 : index
    %c143 = arith.constant 143 : index
    %60 = vector.load %arg7[%c0_33, %c143] : memref<8x401xf32, #tpu.memory_space<vmem>>, vector<8x256xf32>
    %61 = vector.broadcast %20 : vector<1x256xf32> to vector<8x256xf32>
    %62 = arith.mulf %60, %61 : vector<8x256xf32>
    %c48 = arith.constant 48 : index
    %c0_34 = arith.constant 0 : index
    %63 = vector.load %arg8[%c48, %c0_34] : memref<72x256xf32, #tpu.memory_space<vmem>>, vector<8x256xf32>
    tpu.vector_store %arg8[%c48, %c0_34], %62 {strides = array<i32>} : memref<72x256xf32, #tpu.memory_space<vmem>>, vector<8x256xf32>,
    %c0_35 = arith.constant 0 : index
    %c144 = arith.constant 144 : index
    %64 = vector.load %arg7[%c0_35, %c144] : memref<8x401xf32, #tpu.memory_space<vmem>>, vector<8x256xf32>
    %c56 = arith.constant 56 : index
    %c0_36 = arith.constant 0 : index
    %65 = vector.load %arg8[%c56, %c0_36] : memref<72x256xf32, #tpu.memory_space<vmem>>, vector<8x256xf32>
    tpu.vector_store %arg8[%c56, %c0_36], %64 {strides = array<i32>} : memref<72x256xf32, #tpu.memory_space<vmem>>, vector<8x256xf32>,
    %c0_37 = arith.constant 0 : index
    %c145 = arith.constant 145 : index
    %66 = vector.load %arg7[%c0_37, %c145] : memref<8x401xf32, #tpu.memory_space<vmem>>, vector<8x256xf32>
    %67 = vector.broadcast %24 : vector<1x256xf32> to vector<8x256xf32>
    %68 = arith.mulf %66, %67 : vector<8x256xf32>
    %c64 = arith.constant 64 : index
    %c0_38 = arith.constant 0 : index
    %69 = vector.load %arg8[%c64, %c0_38] : memref<72x256xf32, #tpu.memory_space<vmem>>, vector<8x256xf32>
    tpu.vector_store %arg8[%c64, %c0_38], %68 {strides = array<i32>} : memref<72x256xf32, #tpu.memory_space<vmem>>, vector<8x256xf32>,
    %c0_39 = arith.constant 0 : index
    %c0_40 = arith.constant 0 : index
    %70 = vector.load %arg8[%c0_39, %c0_40] : memref<72x256xf32, #tpu.memory_space<vmem>>, vector<72x256xf32>
    %71 = arith.truncf %70 : vector<72x256xf32> to vector<72x256xbf16>
    %cst_41 = arith.constant dense<0.000000e+00> : vector<32x256xf32>
    %72 = tpu.matmul %29, %71, %cst_41 {dimension_numbers = #tpu.dot_dimension_numbers<[1], [0], [0], [1], [0, 0, 1, 1], [], []>} : vector<32x72xbf16>, vector<72x256xbf16>, vector<32x256xf32> -> vector<32x256xf32>
    %73 = vector.broadcast %30 : vector<32x1xf32> to vector<32x256xf32>
    %74 = arith.addf %72, %73 : vector<32x256xf32>
    %cst_42 = arith.constant 0.000000e+00 : f32
    %75 = vector.broadcast %cst_42 : f32 to vector<32x256xf32>
    %76 = arith.maximumf %74, %75 : vector<32x256xf32>
    %c0_43 = arith.constant 0 : index
    %c0_44 = arith.constant 0 : index
    %c0_45 = arith.constant 0 : index
    %77 = vector.load %arg6[%c0_43, %c0_44, %c0_45] : memref<1x32x256xf32, #tpu.memory_space<vmem>>, vector<1x32x256xf32>
    %78 = vector.shape_cast %77 : vector<1x32x256xf32> to vector<32x256xf32>
    %79 = vector.shape_cast %76 : vector<32x256xf32> to vector<1x32x256xf32>
    tpu.vector_store %arg6[%c0_43, %c0_44, %c0_45], %79 {strides = array<i32>} : memref<1x32x256xf32, #tpu.memory_space<vmem>>, vector<1x32x256xf32>,
    return
  }
  func.func @transform_0(%arg0: i32) -> (i32, i32, i32) {
    %c0_i32 = arith.constant 0 : i32
    %c0_i32_0 = arith.constant 0 : i32
    %c0_i32_1 = arith.constant 0 : i32
    return %arg0, %c0_i32, %c0_i32_0 : i32, i32, i32
  }
  func.func @transform_1(%arg0: i32) -> (i32, i32) {
    %c0_i32 = arith.constant 0 : i32
    %c0_i32_0 = arith.constant 0 : i32
    %c0_i32_1 = arith.constant 0 : i32
    return %c0_i32, %c0_i32_0 : i32, i32
  }
  func.func @transform_2(%arg0: i32) -> (i32, i32) {
    %c0_i32 = arith.constant 0 : i32
    %c0_i32_0 = arith.constant 0 : i32
    %c0_i32_1 = arith.constant 0 : i32
    return %c0_i32, %c0_i32_0 : i32, i32
  }
  func.func @transform_3(%arg0: i32) -> (i32, i32) {
    %c0_i32 = arith.constant 0 : i32
    %c0_i32_0 = arith.constant 0 : i32
    %c0_i32_1 = arith.constant 0 : i32
    return %c0_i32, %c0_i32_0 : i32, i32
  }
  func.func @transform_4(%arg0: i32) -> (i32, i32) {
    %c0_i32 = arith.constant 0 : i32
    %c0_i32_0 = arith.constant 0 : i32
    %c0_i32_1 = arith.constant 0 : i32
    return %c0_i32, %c0_i32_0 : i32, i32
  }
  func.func @transform_5(%arg0: i32) -> (i32, i32, i32) {
    %c0_i32 = arith.constant 0 : i32
    %c0_i32_0 = arith.constant 0 : i32
    %c0_i32_1 = arith.constant 0 : i32
    return %arg0, %c0_i32, %c0_i32_0 : i32, i32, i32
  }
}

</mosaic_0001>

<bundles_post_ra>
// kernel: tpu_custom_call.1
= control target key start
LH: loop header
LB: loop body
LE: loop exit
PB: predicated region body
PF: predicated region fallthrough
CT: control target
= control target key end

     0   :  { %10 = vsyncpa [#allocation5], 0  ;;  %s1374_s0 = inlined_call_operand.hbm [shape: f32[2,16,256], index: 0, kind: input, shape index: {}]   ;;  %s1375_s1 = inlined_call_operand.vmem [shape: bf16[8,16], index: 1, kind: input, shape index: {}]   ;;  %s1376_s2 = inlined_call_operand.vmem [shape: f32[8,1], index: 2, kind: input, shape index: {}]   ;;  %s1377_s3 = inlined_call_operand.vmem [shape: bf16[32,72], index: 3, kind: input, shape index: {}]   ;;  %s1378_s4 = inlined_call_operand.vmem [shape: f32[32,1], index: 4, kind: input, shape index: {}]   ;;  %s1379_s5 = inlined_call_operand.hbm [shape: f32[2,32,256], index: 5, kind: output, shape index: {}]  }
   0x1   :  { %12 = vsyncpa [#allocation5 + $0x1], 0 }
   0x2   :  { %13 = vsyncpa [#allocation6], 0 }
   0x3   :  { %15 = vsyncpa [#allocation6 + $0x1], 0  ;;  %s1122_s18 = smov 0   ;;  %s1124_s19 = smov 0  }
   0x4   :  { %s1126_s20 = smov 0   ;;  %s1128_s21 = smov 0  }
   0x5 LB: > { %s1143_s22 = sadd.s32 4294967295, %s1075_s21   ;;  %s810_s23 = sadd.s32 4294967294, %s1075_s21   ;;  %s1075_s21 = sphi %s1128_s21, %s1392_s21   ;;  %s1071_s20 = sphi %s1126_s20, %s1391_s20   ;;  %s1067_s19 = sphi %s1124_s19, %s1390_s19   ;;  %s1063_s18 = sphi %s1122_s18, %s1389_s18  }
   0x6   : > { %s1147_s24 = sadd.s32 1, %s1075_s21   ;;  %s28_s25 = sadd.s32 1, %s1071_s20 }
   0x7   : > { %s25_s26 = ssub.s32 %s1075_s21, %s1147_s24  ;;  %p35_p0 = scmp.ne.s32.totalorder %s1071_s20, %s1067_s19 }
   0x8   : > { %p26_p1 = scmp.eq.s32.totalorder %s25_s26, 0  ;;  %p36_p2 = scmp.eq.s32.totalorder %s1075_s21, 0 }
   0x9   : > { %p41_p3 = scmp.ne.s32.totalorder %s1067_s19, %s1063_s18  ;;  %p42_p4 = scmp.eq.s32.totalorder %s1143_s22, 0 }
   0xa   : > { %s1159_s27 = scalar_select %p26_p1, %s1071_s20, %s28_s25  }
   0xb   : > { %p1161_p5 = por %p36_p2, %p35_p0  ;;  %p1165_p6 = por %p42_p4, %p41_p3 }
   0xc   : > { %p149_p7 = scmp.eq.s32.totalorder %s1143_s22, 1  ;;  %p155_p8 = scmp.eq.s32.totalorder %s810_s23, 1 }
   0xd   : > { %p858_p10 = scmp.lt.s32.totalorder %s1075_s21, 2  ;;  %s187_s7 = sand.u32 1, %s1071_s20  }
   0xe   : > { %p1172_p11 = por %p149_p7, %p35_p0  ;;  %p1176_p12 = por %p155_p8, %p41_p3 }
   0xf   : > { %s834_s8 = sshll.u32 %s1075_s21, 9  ;;  %s813_s9 = sshll.u32 %s187_s7, 5 }
  0x10   : > { %s1383_s30 = scalar_select %p1172_p11, 1, 0 }
  0x11   : > { %s1384_s6 = scalar_select %p1176_p12, 1, 0 }
  0x12   : > { %s1185_s12 = scalar_lea.hbm %s1374_s0, %s834_s8  ;;  %s191_s13 = scalar_lea.vmem [#allocation4], %s813_s9 }
  0x13   : > { %s198_s14 = sshll.u32 %s191_s13, 4  ;;  %p1189_p13 = pnand %p858_p10, %p1161_p5  ;;  %s1193_s14 = int_to_ptr.vmem [resolvable:$true] %s198_s14 }
  0x14   : > { %s1195_s16 = scalar_lea.sflag [#allocation5], %s187_s7  ;;  %s979_s17 = scalar_lea.hbm %s1185_s12, 512 }
  0x15   : > { %p980_p0 = scmp.ne.s32.totalorder %s1185_s12, %s979_s17  ;;  %p981_p1 = pneg %p1189_p13 }
  0x16   : > { %s984_s26 = scalar_lea.hbm %s1374_s0, 1024  ;;  %p985_p4 = scmp.lt.u32.totalorder %s1185_s12, %s1374_s0 }
  0x17   : > { %p982_p2 = pnand %p981_p1, %p980_p0  ;;  %p986_p5 = scmp.lt.u32.totalorder %s984_s26, %s979_s17 }
  0x18   : > { %p988_p8 = scmp.lt.u32.totalorder %s979_s17, %s1185_s12 }
  0x19   : > { %p983_p3 = pneg %p982_p2  ;;  %p987_p7 = por %p986_p5, %p985_p4 }
  0x1b   : > { %p989_p10 = por %p988_p8, %p987_p7 }
  0x1d   : > { %p990_p9 = pnand %p989_p10, %p983_p3 }
  0x1f   : > { %993 = shalt.err (!%p990_p9)
}
  0x20   : > { %s994_s7 = scalar_lea.vmem %s1193_s14, 512  ;;  %s1077_s9 = smov [#allocation4]  }
  0x21   : > { %p995_p0 = scmp.ne.s32.totalorder %s1193_s14, %s994_s7  ;;  %s999_s10 = sshll.u32 %s1077_s9, 4  ;;  %s1000_s10 = int_to_ptr.vmem [resolvable:$false] %s999_s10 }
  0x22   : > { %s1001_s11 = scalar_lea.vmem %s1000_s10, 1024  ;;  %p1002_p11 = scmp.lt.s32.totalorder %s1193_s14, %s1000_s10 }
  0x23   : > { %p997_p2 = pnand %p995_p0, %p981_p1  ;;  %p1003_p4 = scmp.lt.s32.totalorder %s1001_s11, %s994_s7 }
  0x25   : > { %p998_p12 = pneg %p997_p2  ;;  %p1004_p5 = por %p1003_p4, %p1002_p11 }
  0x27   : > { %p1005_p7 = pnand %p1004_p5, %p998_p12 }
  0x29   : > { %1008 = shalt.err (!%p1005_p7)
}
  0x2a   : > { %s1078_s13 = smov 256   ;;  %s1079_s17 = smov 16  }
  0x2b   : > { %853 = dma.hbm_to_vmem [thread:$0]  (!%p1189_p13), %s1185_s12, 512, %s1193_s14, %s1195_s16, %s1078_s13, %s1078_s13, %s1079_s17  }
  0x2c   : > { %p816_p9 = scmp.ge.s32.totalorder %s1075_s21, 1  ;;  %p206_p1 = scmp.lt.s32.totalorder %s1075_s21, 3 }
  0x2e   : > { %p207_p3 = pnand %p816_p9, %p206_p1 }
  0x2f   : > { %s1226_s23 = sand.u32 (!%p207_p3), 1, %s1067_s19  }
  0x30   : > { %210 = sbr.rel (%p207_p3) target bundleno = 662 (0x296), region = 40  ;;  %s817_s25 = sshll.u32 (!%p207_p3), %s1226_s23, 5 }
  0x31   : > { %s213_s26 = scalar_lea.sflag (!%p207_p3), [#allocation5], %s1226_s23  ;;  %s216_s28 = scalar_lea.vmem (!%p207_p3), [#allocation4], %s817_s25 }
  0x37   : > { %1054 = dma.done.wait (%p1165_p6), %s213_s26, 512  }
  0x38   : > { %1056 = vsyncadd (%p1165_p6), %s213_s26, 4294966784  ;;  %v244_v0 = vlaneseq  ;;  %v1080_v1 = vmov 0   ;;  %v299_v6 = vld [vmem:[%s216_s28 + $0x8] sm:$0xff]  ;;  %v301_v7 = vld [vmem:[%s216_s28 + $0x18] sm:$0xff]  ;;  %v1081_v9 = vmov 0.0   ;;  %vm309_vm4 = vcmask 130048  }
  0x39   : > { %345 = vmatprep.mubr.bf16.mxu0 %v1080_v1  ;;  %905 = vset.pattern.permute.xlu0 %v1080_v1  ;;  %v298_v8 = vld [vmem:[%s216_s28] sm:$0xff]  ;;  %v303_v12 = vpack.c.bf16 %v301_v7, %v299_v6  ;;  %v300_v13 = vld [vmem:[%s216_s28 + $0x10] sm:$0xff]  ;;  %s1082_s16 = smov 113   ;;  %s1083_s8 = smov 111   ;;  %vm286_vm5 = vcmask 138240   ;;  %vm417_vm6 = vcmask 924672  }
  0x3a   : > { %v245_v2 = vand.u32 127, %v244_v0  ;;  %696 = vmatprep.mubr.bf16.mxu1 %v1080_v1  ;;  %976 = vset.pattern.permute.xlu1 %v1080_v1  ;;  %v289_v14 = vld [vmem:[%s1376_s2] sm:$0xff]  ;;  %v302_v15 = vpack.c.bf16 %v300_v13, %v298_v8  ;;  %s1084_s7 = smov 127   ;;  %s1085_s9 = smov 1   ;;  %287 = vst.msk [vmem:[#allocation2 + $0x18] sm:$0xff] %vm286_vm5, %v1081_v9  ;;  %vm448_vm7 = vcmask 1039360  }
  0x3b   : > { %306 = vperm.xlu0 %905, %v289_v14   ;;  %313 = vmatprep.subr.bf16.mxu0 %v303_v12  ;;  %v288_v20 = vld [vmem:[%s1375_s1] sm:$0xf]  ;;  %s1086_s10 = smov 15   ;;  %s1087_s11 = smov 17   ;;  %vm367_vm8 = vcmask 908288   ;;  %vm465_vm9 = vcmask 7168  }
  0x3c   : > { %v246_v3 = vadd.s32 128, %v245_v2  ;;  %v251_v4 = vand.u32 15, %v245_v2  ;;  %314 = vmatpush1.bf16.msra.mxu0 %v302_v15  ;;  %s1088_s13 = smov 16   ;;  %vm434_vm10 = vcmask 121856   ;;  %s1089_s17 = smov 112   ;;  %vm546_vm11 = vcmask 916480  }
  0x3d   : > { %vm647_vm12 = vcmask 1043456   ;;  %vm640_vm13 = vcmask 588800   ;;  %s835_s26 = sshll.u32 %s1143_s22, 10  ;;  %s724_s12 = scalar_lea.sflag [#allocation6], %s1226_s23 }
  0x3e   : > { %v258_v5 = vand.u32 15, %v246_v3  ;;  %vm271_vm0 = vcmp.gt.s32.totalorder %v251_v4, 0  ;;  %vm277_vm1 = vcmp.lt.s32.totalorder %v251_v4, 15  ;;  %s1329_s29 = scalar_lea.hbm %s1379_s5, %s835_s26  ;;  %p1386_p11 = scmp.ne.s32.totalorder %s1383_s30, 0 }
  0x3f   : > { %v819_v10 = vsel %vm271_vm0, 1.0, %v1081_v9  ;;  %v821_v11 = vsel %vm277_vm1, 1.0, %v1081_v9  ;;  %823 = vmatmul.mubr.msk.bf16.vlgmr.msra.gmra.mrb[0].mxu0 %vm309_vm4, %v288_v20  ;;  %v296_v20 = vld [vmem:[%s1378_s4 + $0x10] sm:$0xff]  ;;  %s1090_s15 = smov [#allocation7]  }
  0x40   : > { %vm272_vm2 = vcmp.gt.s32.totalorder %v258_v5, 0  ;;  %vm278_vm3 = vcmp.lt.s32.totalorder %v258_v5, 15  ;;  %686 = vmatprep.mubr.bf16.mxu0 %v1080_v1 }
  0x41   : > { %v820_v16 = vsel %vm272_vm2, 1.0, %v1081_v9  ;;  %v822_v17 = vsel %vm278_vm3, 1.0, %v1081_v9  ;;  %v478_v61 = vld [vmem:[#allocation2 + $0x18] sm:$0xff] }
  0x42   : > { %v906_v18 = vpack.i.bf16 %v820_v16, %v819_v10  ;;  %v911_v19 = vpack.i.bf16 %v822_v17, %v821_v11  ;;  %v295_v17 = vld [vmem:[%s1378_s4 + $0x8] sm:$0xff] }
  0x44   : > { %912 = vrot.lane.b32.xlu1 %v911_v19, %s1082_s16  ;;  %907 = vrot.lane.b32.xlu0 %v906_v18, %s1083_s8 }
  0x48   : > { %917 = vrot.lane.b32.xlu1 %v906_v18, %s1084_s7  ;;  %922 = vrot.lane.b32.xlu0 %v911_v19, %s1085_s9 }
  0x4c   : > { %927 = vrot.lane.b32.xlu1 %v906_v18, %s1086_s10  ;;  %932 = vrot.lane.b32.xlu0 %v911_v19, %s1087_s11  ;;  %v297_v18 = vld [vmem:[%s1378_s4 + $0x18] sm:$0xff]  ;;  %v294_v19 = vld [vmem:[%s1378_s4] sm:$0xff] }
  0x50   : > { %396 = vrot.lane.b32.xlu0 %v1081_v9, %s1088_s13 }
  0xb6   : > { %v913_v21 = vpop.permute.xlu1 %912 }
  0xb7   : > { %v915_v22 = vunpack.i.h.bf16 %v913_v21  ;;  %v914_v23 = vunpack.i.l.bf16 %v913_v21 }
  0xb9   : > { %v418_v24 = vsel %vm417_vm6, %v914_v23, %v915_v22  ;;  %v422_v36 = vmul.f32 0.0, %v914_v23 }
  0xba   : > { %v918_v25 = vpop.permute.xlu1 %917  ;;  %v307_v30 = vpop.permute.xlu0 %306 }
  0xbb   : > { %v920_v26 = vunpack.i.h.bf16 %v918_v25  ;;  %v919_v27 = vunpack.i.l.bf16 %v918_v25 }
  0xbd   : > { %v449_v28 = vsel %vm448_vm7, %v919_v27, %v920_v26  ;;  %v453_v29 = vmul.f32 0.0, %v919_v27 }
  0xbe   : > { %v908_v31 = vpop.permute.xlu0 %907  ;;  %v928_v56 = vpop.permute.xlu1 %927 }
  0xbf   : > { %459 = vrot.lane.b32.xlu0 %v453_v29, %s1085_s9  ;;  %v910_v32 = vunpack.i.h.bf16 %v908_v31  ;;  %v909_v33 = vunpack.i.l.bf16 %v908_v31  ;;  %v929_v60 = vunpack.i.l.bf16 %v928_v56  ;;  %v930_v63 = vunpack.i.h.bf16 %v928_v56 }
  0xc1   : > { %v368_v34 = vsel %vm367_vm8, %v909_v33, %v910_v32  ;;  %v372_v35 = vmul.f32 0.0, %v909_v33  ;;  %v512_v4 = vsel %vm434_vm10, %v929_v60, %v930_v63  ;;  %v518_v8 = vmul.f32 %v930_v63, %v478_v61 }
  0xc2   : > { %v923_v45 = vpop.permute.xlu0 %922 }
  0xc3   : > { %378 = vrot.lane.b32.xlu1 %v372_v35, %s1087_s11  ;;  %v924_v46 = vunpack.i.l.bf16 %v923_v45  ;;  %v925_v55 = vunpack.i.h.bf16 %v923_v45 }
  0xc5   : > { %v483_v62 = vsel %vm465_vm9, %v924_v46, %v925_v55  ;;  %v489_v1 = vmul.f32 %v925_v55, %v478_v61 }
  0xc6   : > { %v933_v0 = vpop.permute.xlu0 %932 }
  0xc7   : > { %428 = vrot.lane.b32.xlu1 %v422_v36, %s1086_s10  ;;  %v935_v5 = vunpack.i.h.bf16 %v933_v0  ;;  %v934_v6 = vunpack.i.l.bf16 %v933_v0 }
  0xc9   : > { %v560_v11 = vsel %vm286_vm5, %v934_v6, %v935_v5  ;;  %v566_v13 = vmul.f32 %v935_v5, %v478_v61 }
  0xca   : > { %v397_v21 = vpop.permute.xlu0 %396 }
 0x112   : > { %v347_v37 = vpop.f32.mrb[0].mxu0 }
 0x113   : > { %v348_v38 = vadd.f32 %v347_v37, %v307_v30  ;;  %v349_v39 = vpop.f32.mrb[1].mxu0 }
 0x114   : > { %v350_v40 = vadd.f32 %v349_v39, %v307_v30  ;;  %v351_v41 = vpop.f32.mrb[2].mxu0 }
 0x115   : > { %v1255_v42 = vmax.f32 %v348_v38, 0.0  ;;  %v352_v43 = vpop.f32.mrb[3].mxu0 }
 0x116   : > { %v1257_v44 = vmax.f32 %v350_v40, 0.0 }
 0x117   : > { %v373_v47 = vmul.f32 %v368_v34, %v1255_v42  ;;  %v423_v52 = vmul.f32 %v418_v24, %v1255_v42  ;;  %v454_v53 = vmul.f32 %v449_v28, %v1255_v42  ;;  %v487_v59 = vmul.f32 %v924_v46, %v1255_v42 }
 0x118   : > { %v424_v48 = vmul.f32 %v915_v22, %v1257_v44  ;;  %v455_v49 = vmul.f32 %v920_v26, %v1257_v44  ;;  %v936_v50 = vpack.i.bf16 %v1257_v44, %v1255_v42  ;;  %v374_v51 = vmul.f32 %v910_v32, %v1257_v44 }
 0x119   : > { %v516_v2 = vmul.f32 %v929_v60, %v1255_v42  ;;  %v488_v3 = vmul.f32 %v483_v62, %v1257_v44  ;;  %v956_v7 = vpack.i.bf16 %v478_v61, %v1257_v44  ;;  %v517_v10 = vmul.f32 %v512_v4, %v1257_v44 }
 0x11a   : > { %937 = vrot.lane.b32.xlu0 %v936_v50, %s1088_s13  ;;  %v941_v54 = vpack.i.bf16 %v374_v51, %v373_v47  ;;  %v946_v57 = vpack.i.bf16 %v424_v48, %v423_v52  ;;  %v951_v58 = vpack.i.bf16 %v455_v49, %v454_v53  ;;  %v564_v12 = vmul.f32 %v934_v6, %v1255_v42 }
 0x11b   : > { %v961_v9 = vpack.i.bf16 %v489_v1, %v488_v3  ;;  %v966_v14 = vpack.i.bf16 %v518_v8, %v517_v10  ;;  %v565_v15 = vmul.f32 %v560_v11, %v1257_v44 }
 0x11c   : > { %942 = vrot.lane.b32.xlu1 %v941_v54, %s1087_s11  ;;  %s818_s11 = sshll.u32 %s1226_s23, 6 }
 0x11d   : > { %v971_v16 = vpack.i.bf16 %v565_v15, %v564_v12 }
 0x11e   : > { %493 = vrot.lane.b32.xlu0 %v487_v59, %s1084_s7 }
 0x120   : > { %947 = vrot.lane.b32.xlu1 %v946_v57, %s1086_s10 }
 0x122   : > { %952 = vrot.lane.b32.xlu0 %v951_v58, %s1085_s9 }
 0x124   : > { %522 = vrot.lane.b32.xlu1 %v516_v2, %s1082_s16 }
 0x126   : > { %957 = vrot.lane.b32.xlu0 %v956_v7, %s1089_s17 }
 0x128   : > { %962 = vrot.lane.b32.xlu1 %v961_v9, %s1084_s7 }
 0x12a   : > { %540 = vrot.lane.b32.xlu0 %v1255_v42, %s1089_s17  ;;  %s242_s17 = scalar_lea.vmem [#allocation7], %s818_s11 }
 0x12b   : > { %s737_s25 = sshll.u32 %s242_s17, 4  ;;  %s1324_s25 = int_to_ptr.vmem [resolvable:$true] %s737_s25 }
 0x12c   : > { %967 = vrot.lane.b32.xlu1 %v966_v14, %s1082_s16  ;;  %s1009_s14 = scalar_lea.vmem %s1324_s25, 1024  ;;  %s1013_s16 = sshll.u32 %s1090_s15, 4  ;;  %s1014_s16 = int_to_ptr.vmem [resolvable:$false] %s1013_s16 }
 0x12d   : > { %p1010_p6 = scmp.ne.s32.totalorder %s1324_s25, %s1009_s14  ;;  %p1016_p8 = scmp.lt.s32.totalorder %s1324_s25, %s1014_s16 }
 0x12e   : > { %574 = vrot.lane.b32.xlu0 %v566_v13, %s1083_s8 }
 0x12f   : > { %p1011_p12 = pnand %p1010_p6, %p1386_p11 }
 0x130   : > { %972 = vrot.lane.b32.xlu1 %v971_v16, %s1083_s8  ;;  %v977_v16 = vld [vmem:[%s1377_s3] sm:$0xff]   ;;  %s1015_s8 = scalar_lea.vmem %s1014_s16, 2048 }
 0x131   : > { %v460_v23 = vpop.permute.xlu0 %459  ;;  %p1012_p13 = pneg %p1011_p12  ;;  %p1017_p10 = scmp.lt.s32.totalorder %s1015_s8, %s1009_s14 }
 0x132   : > { %617 = vperm.xlu0 %905, %v295_v17   ;;  %v978_v17 = vld [vmem:[%s1377_s3 + $0x8] sm:$0xff]  }
 0x133   : > { %p1018_p0 = por %p1017_p10, %p1016_p8 }
 0x134   : > { %612 = vperm.xlu1 %976, %v294_v19  }
 0x135   : > { %v379_v22 = vpop.permute.xlu1 %378  ;;  %p1019_p2 = pnand %p1018_p0, %p1012_p13 }
 0x136   : > { %627 = vperm.xlu0 %905, %v297_v18  }
 0x138   : > { %622 = vperm.xlu1 %976, %v296_v20  }
 0x139   : > { %v429_v24 = vpop.permute.xlu1 %428 }
 0x18c   : > { %v938_v25 = vpop.permute.xlu0 %937 }
 0x18d   : > { %v940_v26 = vunpack.i.h.bf16 %v938_v25  ;;  %v939_v27 = vunpack.i.l.bf16 %v938_v25 }
 0x18e   : > { %v943_v28 = vpop.permute.xlu1 %942 }
 0x18f   : > { %v945_v29 = vunpack.i.h.bf16 %v943_v28  ;;  %v944_v30 = vunpack.i.l.bf16 %v943_v28  ;;  %v402_v32 = vsel %vm309_vm4, %v397_v21, %v939_v27  ;;  %v403_v35 = vsel %vm309_vm4, %v939_v27, %v940_v26 }
 0x190   : > { %v494_v31 = vpop.permute.xlu0 %493 }
 0x191   : > { %v384_v33 = vsel %vm286_vm5, %v379_v22, %v944_v30  ;;  %v385_v34 = vsel %vm286_vm5, %v944_v30, %v945_v29 }
 0x192   : > { %v600_v36 = vpack.c.bf16 %v402_v32, %v384_v33  ;;  %v948_v37 = vpop.permute.xlu1 %947  ;;  %v601_v38 = vpack.c.bf16 %v403_v35, %v385_v34 }
 0x193   : > { %v950_v39 = vunpack.i.h.bf16 %v948_v37  ;;  %v949_v40 = vunpack.i.l.bf16 %v948_v37 }
 0x194   : > { %v953_v41 = vpop.permute.xlu0 %952  ;;  %654 = vmatprep.subr.bf16.mxu0 %v601_v38  ;;  %836 = vmatprep.subr.bf16.mxu1 %v601_v38 }
 0x195   : > { %v955_v43 = vunpack.i.h.bf16 %v953_v41  ;;  %v954_v45 = vunpack.i.l.bf16 %v953_v41  ;;  %655 = vmatpush1.bf16.msra.mxu0 %v600_v36  ;;  %841 = vmatpush1.bf16.msra.mxu1 %v600_v36  ;;  %v435_v47 = vsel %vm434_vm10, %v429_v24, %v949_v40  ;;  %v436_v49 = vsel %vm434_vm10, %v949_v40, %v950_v39 }
 0x196   : > { %v523_v46 = vpop.permute.xlu1 %522 }
 0x197   : > { %v466_v48 = vsel %vm465_vm9, %v460_v23, %v954_v45  ;;  %v467_v50 = vsel %vm465_vm9, %v954_v45, %v955_v43 }
 0x198   : > { %v602_v51 = vpack.c.bf16 %v466_v48, %v435_v47  ;;  %v958_v52 = vpop.permute.xlu0 %957  ;;  %v603_v53 = vpack.c.bf16 %v467_v50, %v436_v49 }
 0x199   : > { %v960_v57 = vunpack.i.h.bf16 %v958_v52  ;;  %v959_v58 = vunpack.i.l.bf16 %v958_v52 }
 0x19a   : > { %v963_v54 = vpop.permute.xlu1 %962  ;;  %656 = vmatprep.subr.bf16.mxu0 %v603_v53  ;;  %837 = vmatprep.subr.bf16.mxu1 %v603_v53 }
 0x19b   : > { %v965_v55 = vunpack.i.h.bf16 %v963_v54  ;;  %v964_v56 = vunpack.i.l.bf16 %v963_v54  ;;  %657 = vmatpush1.bf16.msra.mxu0 %v602_v51  ;;  %842 = vmatpush1.bf16.msra.mxu1 %v602_v51  ;;  %v548_v3 = vsel %vm546_vm11, %v959_v58, %v960_v57 }
 0x19c   : > { %v541_v62 = vpop.permute.xlu0 %540 }
 0x19d   : > { %v499_v59 = vsel %vm448_vm7, %v494_v31, %v964_v56  ;;  %v500_v60 = vsel %vm448_vm7, %v964_v56, %v965_v55  ;;  %v547_v4 = vsel %vm546_vm11, %v541_v62, %v959_v58 }
 0x19e   : > { %v604_v61 = vpack.c.bf16 %v499_v59, %v1255_v42  ;;  %v968_v63 = vpop.permute.xlu1 %967  ;;  %v605_v0 = vpack.c.bf16 %v500_v60, %v1257_v44 }
 0x19f   : > { %v970_v1 = vunpack.i.h.bf16 %v968_v63  ;;  %v969_v2 = vunpack.i.l.bf16 %v968_v63 }
 0x1a0   : > { %658 = vmatprep.subr.bf16.mxu0 %v605_v0  ;;  %838 = vmatprep.subr.bf16.mxu1 %v605_v0  ;;  %v575_v11 = vpop.permute.xlu0 %574 }
 0x1a1   : > { %v528_v5 = vsel %vm417_vm6, %v523_v46, %v969_v2  ;;  %659 = vmatpush1.bf16.msra.mxu0 %v604_v61  ;;  %843 = vmatpush1.bf16.msra.mxu1 %v604_v61  ;;  %v529_v6 = vsel %vm417_vm6, %v969_v2, %v970_v1 }
 0x1a2   : > { %v606_v7 = vpack.c.bf16 %v547_v4, %v528_v5  ;;  %v973_v8 = vpop.permute.xlu1 %972  ;;  %v607_v9 = vpack.c.bf16 %v548_v3, %v529_v6 }
 0x1a3   : > { %v975_v42 = vunpack.i.h.bf16 %v973_v8  ;;  %v974_v10 = vunpack.i.l.bf16 %v973_v8 }
 0x1a4   : > { %660 = vmatprep.subr.bf16.mxu0 %v607_v9  ;;  %839 = vmatprep.subr.bf16.mxu1 %v607_v9 }
 0x1a5   : > { %v577_v44 = vsel %vm367_vm8, %v975_v42, %v575_v11  ;;  %661 = vmatpush1.bf16.msra.mxu0 %v606_v7  ;;  %844 = vmatpush1.bf16.msra.mxu1 %v606_v7  ;;  %v576_v12 = vsel %vm367_vm8, %v974_v10, %v975_v42 }
 0x1a6   : > { %v609_v13 = vpack.c.bf16 %v577_v44, %v577_v44  ;;  %v608_v14 = vpack.c.bf16 %v576_v12, %v576_v12 }
 0x1a8   : > { %826 = vmatprep.subr.msk.bf16.mxu0 %vm647_vm12, %v609_v13  ;;  %840 = vmatprep.subr.msk.bf16.mxu1 %vm647_vm12, %v609_v13  ;;  %v649_v15 = vsel %vm647_vm12, %v608_v14, 0 }
 0x1a9   : > { %663 = vmatpush1.bf16.msra.mxu0 %v649_v15  ;;  %845 = vmatpush1.bf16.msra.mxu1 %v649_v15 }
 0x1ac   : > { %827 = vmatmul.mubr.msk.bf16.vlgmr.msra.gmra.mrb[4].mxu0 %vm640_vm13, %v977_v16  ;;  %828 = vmatmul.mubr.msk.bf16.vlgmr.msra.gmra.mrb[0].mxu1 %vm640_vm13, %v978_v17 }
 0x1b1   : > { %v618_v19 = vpop.permute.xlu0 %617 }
 0x1b3   : > { %v613_v18 = vpop.permute.xlu1 %612 }
 0x1b5   : > { %v628_v21 = vpop.permute.xlu0 %627 }
 0x1b7   : > { %v623_v20 = vpop.permute.xlu1 %622 }
 0x27f   : > { %v688_v22 = vpop.f32.mrb[4].mxu0  ;;  %v698_v23 = vpop.f32.mrb[0].mxu1 }
 0x280   : > { %v689_v24 = vadd.f32 %v688_v22, %v613_v18  ;;  %v699_v25 = vadd.f32 %v698_v23, %v623_v20  ;;  %v690_v26 = vpop.f32.mrb[5].mxu0  ;;  %v700_v27 = vpop.f32.mrb[1].mxu1 }
 0x281   : > { %v691_v28 = vadd.f32 %v690_v26, %v613_v18  ;;  %v701_v29 = vadd.f32 %v700_v27, %v623_v20  ;;  %v692_v30 = vpop.f32.mrb[6].mxu0  ;;  %v702_v31 = vpop.f32.mrb[2].mxu1 }
 0x282   : > { %v707_v32 = vmax.f32 %v689_v24, 0.0  ;;  %v711_v33 = vmax.f32 %v699_v25, 0.0  ;;  %v693_v34 = vadd.f32 %v692_v30, %v618_v19  ;;  %v703_v35 = vadd.f32 %v702_v31, %v628_v21  ;;  %v694_v36 = vpop.f32.mrb[7].mxu0  ;;  %v704_v37 = vpop.f32.mrb[3].mxu1 }
 0x283   : > { %v708_v38 = vmax.f32 %v691_v28, 0.0  ;;  %v712_v39 = vmax.f32 %v701_v29, 0.0  ;;  %v695_v40 = vadd.f32 %v694_v36, %v618_v19  ;;  %v705_v41 = vadd.f32 %v704_v37, %v628_v21 }
 0x284   : > { %715 = vst [vmem:[%s242_s17] sm:$0xff] %v707_v32  ;;  %719 = vst [vmem:[%s242_s17 + $0x20] sm:$0xff] %v711_v33  ;;  %v709_v43 = vmax.f32 %v693_v34, 0.0  ;;  %v713_v45 = vmax.f32 %v703_v35, 0.0 }
 0x285   : > { %716 = vst [vmem:[%s242_s17 + $0x8] sm:$0xff] %v708_v38  ;;  %720 = vst [vmem:[%s242_s17 + $0x28] sm:$0xff] %v712_v39  ;;  %v710_v46 = vmax.f32 %v695_v40, 0.0  ;;  %v714_v47 = vmax.f32 %v705_v41, 0.0 }
 0x286   : > { %717 = vst [vmem:[%s242_s17 + $0x10] sm:$0xff] %v709_v43  ;;  %721 = vst [vmem:[%s242_s17 + $0x30] sm:$0xff] %v713_v45 }
 0x287   : > { %718 = vst [vmem:[%s242_s17 + $0x18] sm:$0xff] %v710_v46  ;;  %722 = vst [vmem:[%s242_s17 + $0x38] sm:$0xff] %v714_v47 }
 0x288   : > { %1022 = shalt.err (!%p1019_p2)
}
 0x289   : > { %s1023_s7 = scalar_lea.hbm %s1329_s29, 1024  ;;  %s1027_s11 = scalar_lea.hbm %s1379_s5, 2048 }
 0x28a   : > { %p1024_p4 = scmp.ne.s32.totalorder %s1329_s29, %s1023_s7  ;;  %p1028_p9 = scmp.lt.u32.totalorder %s1329_s29, %s1379_s5 }
 0x28b   : > { %p1029_p1 = scmp.lt.u32.totalorder %s1027_s11, %s1023_s7  ;;  %p1031_p6 = scmp.lt.u32.totalorder %s1023_s7, %s1329_s29 }
 0x28c   : > { %p1025_p5 = pnand %p1024_p4, %p1386_p11 }
 0x28d   : > { %p1030_p3 = por %p1029_p1, %p1028_p9 }
 0x28e   : > { %p1026_p7 = pneg %p1025_p5 }
 0x28f   : > { %p1032_p12 = por %p1031_p6, %p1030_p3 }
 0x291   : > { %p1033_p13 = pnand %p1032_p12, %p1026_p7 }
 0x293   : > { %1036 = shalt.err (!%p1033_p13)
}
 0x294   : > { %s1091_s22 = smov 256  }
 0x295   : > { %848 = dma.vmem_to_hbm [thread:$0]  (%p1386_p11), %s1324_s25, 1024, %s1329_s29, %s724_s12, %s1091_s22, %s1091_s22, %s1088_s13  }
 0x296 PF: > { %s752_s28 = sand.u32 1, %s1063_s18   ;;  %p1387_p8 = scmp.ne.s32.totalorder %s1384_s6, 0 }
 0x297   : > { %p1388_p10 = scmp.ge.s32.totalorder %s1075_s21, 2  ;;  %s753_s14 = scalar_lea.sflag [#allocation6], %s752_s28 }
 0x299   : > { %p855_p0 = pnand %p1388_p10, %p1387_p8 }
 0x29b   : > { %1058 = dma.done.wait (!%p855_p0), %s753_s14, 1024  }
 0x29c   : > { %1060 = vsyncadd (!%p855_p0), %s753_s14, 4294966272  ;;  %p18_p2 = scmp.ge.s32.totalorder %s1147_s24, 4   ;;  %s1389_s18 = smov %s1067_s19 }
 0x29d   : > { %s1390_s19 = smov %s1071_s20  ;;  %s1391_s20 = smov %s1159_s27 }
 0x29e   : > { %s1392_s21 = smov %s1147_s24  ;;  %20 = sbr.rel (!%p18_p2) target bundleno = 5 (0x5), region = 85 }
 0x2a5   :  { %758 = vsyncpa [#allocation5], 1 }
 0x2a6   :  { %760 = vsyncpa [#allocation5 + $0x1], 1 }
 0x2a7   :  { %761 = vsyncpa [#allocation6], 1 }
 0x2a8   :  { %763 = vsyncpa [#allocation6 + $0x1], 1 }

</bundles_post_ra>
